<compile_context>
chip_gen: v5e
topology: v5e:2x2
jax: 0.10.0
libtpu: 0.0.40
codegen_flags: <defaults>
</compile_context>

<pallas_src>
import jax
import jax.numpy as jnp
from jax.experimental import pallas as pl
from jax.experimental.pallas import tpu as pltpu


# ---------------------------------------------------------------------------
# Kernels — all blocks are NCHW-flattened: (1, C, TILE_HW).
# ---------------------------------------------------------------------------

def _concat_kernel_mxu(zp_ref, x_ref, wf_ref, o_ref):
    # zp_ref: (1, Cout, 1) f32   x_ref: (1, Cin, T)   wf_ref: (Cout, Cin)
    feat = x_ref[0]                                                   # (Cin, T)
    acc = jnp.dot(wf_ref[...], feat, preferred_element_type=jnp.float32)
    acc = acc + zp_ref[0]                                             # lane broadcast
    o_ref[0] = jnp.maximum(acc, 0.0).astype(o_ref.dtype)


def _make_concat_kernel_vpu(c_in):
    # Tiny-C path (C <= 8): the MXU tile would be >95% padding; do c_in
    # unrolled outer-product FMAs on the VPU over the lane-dense HW axis.
    def kernel(zp_ref, x_ref, wf_ref, o_ref):
        feat = x_ref[0].astype(jnp.float32)                           # (Cin, T)
        wf = wf_ref[...].astype(jnp.float32)                          # (Cout, Cin)
        acc = jnp.broadcast_to(zp_ref[0].astype(jnp.float32),
                               (wf.shape[0], feat.shape[1]))          # (Cout, T)
        for i in range(c_in):                                         # unrolled
            acc = acc + wf[:, i:i + 1] * feat[i:i + 1, :]
        o_ref[0] = jnp.maximum(acc, 0.0).astype(o_ref.dtype)
    return kernel


def _sum_kernel(zr_ref, x_ref, o_ref):
    # zr_ref: (1, C, 1) already relu'd + pre-cast to feature dtype;
    # pure broadcast-add on the VPU in the feature dtype.
    o_ref[0] = (x_ref[0] + zr_ref[0]).astype(o_ref.dtype)


# ---------------------------------------------------------------------------
# Tiling / VMEM helpers
# ---------------------------------------------------------------------------

_FALLBACK_VMEM_CAPACITY = 64 << 20      # conservative (v7x); v5e/v6e have 128 MiB


def _vmem_capacity_bytes():
    try:
        return int(pltpu.get_tpu_info().vmem_capacity_bytes)
    except Exception:
        return _FALLBACK_VMEM_CAPACITY


def _round_up(x, m):
    return -(-x // m) * m


def _pick_tile_hw(hw, c, itemsize, tile_bytes_cap, batch, min_steps=4):
    """Fixed 128-multiple lane tile (ragged last block via cdiv grid)."""
    if hw <= 128:
        return hw                               # full-extent block, tiny anyway
    cap_lanes = max(128, (tile_bytes_cap // max(1, c * itemsize)) // 128 * 128)
    t = min(cap_lanes, _round_up(hw, 128))
    # Guarantee enough grid steps to feed both v7x TensorCores (cheap no-op on
    # 1-TC chips: only triggers when the whole problem is a few MiB).
    while t > 128 and batch * pl.cdiv(hw, t) < min_steps:
        t = max(128, (t // 2) // 128 * 128)
    return t


# ---------------------------------------------------------------------------
# Wrapper
# ---------------------------------------------------------------------------

def latent_combination_layer(latent_code, feature, conv_w, conv_b,
                             combine_method="concat"):
    """Pallas implementation of LatentCombinationLayer.forward (NCHW-native).

    latent_code : [B, L]
    feature     : [B, C, H, W]   (NCHW, as in PyTorch)
    conv_w      : [C, L + C] for 'concat', [C, L] for 'sum' (1x1 conv weight squeezed)
    conv_b      : [C]
    returns     : [B, C, H, W]
    """
    if latent_code.ndim != 2:
        # TODO(synk): 4-D latent path (F.interpolate nearest resize) not implemented.
        raise NotImplementedError("only the 2-D latent_code path is implemented")

    B, C, H, W = feature.shape
    L = latent_code.shape[1]
    HW = H * W
    itemsize = jnp.dtype(feature.dtype).itemsize

    vmem_cap = _vmem_capacity_bytes()
    tile_bytes_cap = 8 << 20 if vmem_cap >= (64 << 20) else 4 << 20

    # Free reshape: NCHW is already (C, HW)-contiguous per batch.
    x = feature.reshape(B, C, HW)
    tile_hw = _pick_tile_hw(HW, C, itemsize, tile_bytes_cap, B)
    grid = (B, pl.cdiv(HW, tile_hw))

    # Explicit scoped-VMEM budget: 2x in-block + 2x out-block + weights + slack.
    tile_bytes = C * tile_hw * itemsize
    small_bytes = 2 * C * (C + 1) * 4
    vmem_limit = int(min(max(4 * tile_bytes + 2 * small_bytes + (4 << 20), 32 << 20),
                         max(vmem_cap - (16 << 20), 32 << 20)))

    x_spec = pl.BlockSpec((1, C, tile_hw), lambda b, t: (b, 0, t))
    o_spec = pl.BlockSpec((1, C, tile_hw), lambda b, t: (b, 0, t))
    zp_spec = pl.BlockSpec((1, C, 1), lambda b, t: (b, 0, 0))
    params = pltpu.CompilerParams(
        dimension_semantics=("parallel", "parallel"),
        vmem_limit_bytes=vmem_limit)

    z32 = latent_code.astype(jnp.float32)
    w32 = conv_w.astype(jnp.float32)
    b32 = conv_b.astype(jnp.float32)

    if combine_method == "concat":
        # Hoisted latent projection: zproj[b, :] = W[:, :L] @ z[b] + bias.
        zproj = (jnp.dot(z32, w32[:, :L].T, precision=jax.lax.Precision.HIGHEST)
                 + b32[None, :]).reshape(B, C, 1)
        # Feature-part weights travel in the feature dtype (true bf16 MXU path).
        wf = conv_w[:, L:].astype(feature.dtype)              # (Cout, Cin=C)
        kernel = _make_concat_kernel_vpu(C) if C <= 8 else _concat_kernel_mxu
        cost = pl.CostEstimate(
            flops=2 * B * C * C * HW + 2 * B * C * HW,
            transcendentals=0,
            bytes_accessed=2 * B * C * HW * itemsize
                           + C * C * itemsize + B * C * 4)
        out = pl.pallas_call(
            kernel,
            out_shape=jax.ShapeDtypeStruct((B, C, HW), feature.dtype),
            grid_spec=pltpu.PrefetchScalarGridSpec(
                num_scalar_prefetch=0,
                grid=grid,
                in_specs=[
                    zp_spec,
                    x_spec,
                    pl.BlockSpec((C, C), lambda b, t: (0, 0)),
                ],
                out_specs=o_spec,
            ),
            compiler_params=params,
            cost_estimate=cost,
        )(zproj, x, wf)
    elif combine_method == "sum":
        # Whole latent branch hoisted: out = feature + relu(W @ z + bias).
        zrelu = jnp.maximum(
            jnp.dot(z32, w32.T, precision=jax.lax.Precision.HIGHEST) + b32[None, :],
            0.0).astype(feature.dtype).reshape(B, C, 1)
        cost = pl.CostEstimate(
            flops=B * C * HW,
            transcendentals=0,
            bytes_accessed=2 * B * C * HW * itemsize + B * C * itemsize)
        out = pl.pallas_call(
            _sum_kernel,
            out_shape=jax.ShapeDtypeStruct((B, C, HW), feature.dtype),
            grid_spec=pltpu.PrefetchScalarGridSpec(
                num_scalar_prefetch=0,
                grid=grid,
                in_specs=[zp_spec, x_spec],
                out_specs=o_spec,
            ),
            compiler_params=params,
            cost_estimate=cost,
            input_output_aliases={1: 0},    # feature aliases the output buffer
        )(zrelu, x)
    else:
        raise NotImplementedError(combine_method)

    return out.reshape(B, C, H, W)


# ---------------------------------------------------------------------------
# Reference + test
# ---------------------------------------------------------------------------

def _reference(latent_code, feature, conv_w, conv_b, combine_method):
    """Pure-JAX reference matching the PyTorch forward (f32)."""
    B, C, H, W = feature.shape
    L = latent_code.shape[1]
    z_tiled = jnp.tile(latent_code.reshape(B, L, 1, 1), (1, 1, H, W))
    if combine_method == "concat":
        inp = jnp.concatenate([z_tiled, feature], axis=1)      # (B, L+C, H, W)
        out = jnp.einsum("oc,bchw->bohw", conv_w, inp) + conv_b[None, :, None, None]
        return jnp.maximum(out, 0.0)
    else:
        out = jnp.einsum("oc,bchw->bohw", conv_w, z_tiled) + conv_b[None, :, None, None]
        return feature + jnp.maximum(out, 0.0)


def _run_case(key, B, L, C, H, W, dtype=jnp.float32, atol=1e-5, rtol=1e-5):
    k1, k2, k3, k4, k5, k6 = jax.random.split(key, 6)
    latent_code = jax.random.normal(k1, (B, L), dtype=jnp.float32)
    feature = jax.random.normal(k2, (B, C, H, W), dtype=jnp.float32).astype(dtype)
    w_concat = 0.1 * jax.random.normal(k3, (C, L + C), dtype=jnp.float32)
    b_concat = 0.1 * jax.random.normal(k4, (C,), dtype=jnp.float32)
    w_sum = 0.1 * jax.random.normal(k5, (C, L), dtype=jnp.float32)
    b_sum = 0.1 * jax.random.normal(k6, (C,), dtype=jnp.float32)
    feat32 = feature.astype(jnp.float32)

    ok = True
    out_c = latent_combination_layer(latent_code, feature, w_concat, b_concat, "concat")
    out_c = jax.block_until_ready(out_c)
    ref_c = _reference(latent_code, feat32, w_concat, b_concat, "concat")
    ok &= bool(jnp.allclose(out_c.astype(jnp.float32), ref_c, atol=atol, rtol=rtol))

    out_s = latent_combination_layer(latent_code, feature, w_sum, b_sum, "sum")
    out_s = jax.block_until_ready(out_s)
    ref_s = _reference(latent_code, feat32, w_sum, b_sum, "sum")
    ok &= bool(jnp.allclose(out_s.astype(jnp.float32), ref_s, atol=atol, rtol=rtol))
    return ok


if __name__ == "__main__":
    key = jax.random.PRNGKey(0)
    k1, k2, k3, k4 = jax.random.split(key, 4)

    ok = True
    # Small-C config (VPU channel-matmul path), matches the module defaults.
    ok &= _run_case(k1, B=2, L=8, C=4, H=16, W=16)
    # Larger-C config (MXU path).
    ok &= _run_case(k2, B=2, L=16, C=64, H=16, W=16)
    # Non-128-multiple spatial size (ragged last block, MXU path).
    ok &= _run_case(k3, B=2, L=8, C=16, H=15, W=10)
    # bf16 feature (bf16 MXU matmul / bf16 broadcast-add), looser tolerance.
    ok &= _run_case(k4, B=2, L=16, C=32, H=16, W=16,
                    dtype=jnp.bfloat16, atol=5e-2, rtol=5e-2)

    print("KERNEL_OK" if ok else "KERNEL_MISMATCH")
</pallas_src>

<mosaic_0001>
module attributes {stable_mosaic.version = 11 : i64} {
  func.func @kernel(%arg0: i32, %arg1: i32, %arg2: memref<1x4x1xf32, #tpu.memory_space<vmem>>, %arg3: memref<1x4x128xf32, #tpu.memory_space<vmem>>, %arg4: memref<4x4xf32, #tpu.memory_space<vmem>>, %arg5: memref<1x4x128xf32, #tpu.memory_space<vmem>>) attributes {dimension_semantics = [#tpu.dimension_semantics<parallel>, #tpu.dimension_semantics<parallel>], iteration_bounds = array<i64: 2, 2>, scalar_prefetch = 0 : i64, scratch_operands = 0 : i64, tpu.core_type = #tpu.core_type<tc>, window_params = [{transform_indices = @transform_0, window_bounds = array<i64: 1, 4, 1>}, {transform_indices = @transform_1, window_bounds = array<i64: 1, 4, 128>}, {pipeline_mode = #tpu.pipeline_mode<synchronous>, transform_indices = @transform_2, window_bounds = array<i64: 4, 4>}, {transform_indices = @transform_3, window_bounds = array<i64: 1, 4, 128>}]} {
    %c0 = arith.constant 0 : index
    %c0_0 = arith.constant 0 : index
    %c0_1 = arith.constant 0 : index
    %0 = vector.load %arg3[%c0, %c0_0, %c0_1] : memref<1x4x128xf32, #tpu.memory_space<vmem>>, vector<1x4x128xf32>
    %1 = vector.shape_cast %0 : vector<1x4x128xf32> to vector<4x128xf32>
    %c0_2 = arith.constant 0 : index
    %c0_3 = arith.constant 0 : index
    %2 = vector.load %arg4[%c0_2, %c0_3] : memref<4x4xf32, #tpu.memory_space<vmem>>, vector<4x4xf32>
    %c0_4 = arith.constant 0 : index
    %c0_5 = arith.constant 0 : index
    %c0_6 = arith.constant 0 : index
    %3 = vector.load %arg2[%c0_4, %c0_5, %c0_6] : memref<1x4x1xf32, #tpu.memory_space<vmem>>, vector<1x4x1xf32>
    %4 = vector.shape_cast %3 : vector<1x4x1xf32> to vector<4x1xf32>
    %5 = vector.shape_cast %4 : vector<4x1xf32> to vector<4x1xf32>
    %6 = vector.broadcast %5 : vector<4x1xf32> to vector<4x128xf32>
    %7 = vector.extract_strided_slice %2 {offsets = [0, 0], sizes = [4, 1], strides = [1, 1]} : vector<4x4xf32> to vector<4x1xf32>
    %8 = vector.extract_strided_slice %1 {offsets = [0, 0], sizes = [1, 128], strides = [1, 1]} : vector<4x128xf32> to vector<1x128xf32>
    %9 = vector.broadcast %7 : vector<4x1xf32> to vector<4x128xf32>
    %10 = vector.broadcast %8 : vector<1x128xf32> to vector<4x128xf32>
    %11 = arith.mulf %9, %10 : vector<4x128xf32>
    %12 = arith.addf %6, %11 : vector<4x128xf32>
    %13 = vector.extract_strided_slice %2 {offsets = [0, 1], sizes = [4, 1], strides = [1, 1]} : vector<4x4xf32> to vector<4x1xf32>
    %14 = vector.extract_strided_slice %1 {offsets = [1, 0], sizes = [1, 128], strides = [1, 1]} : vector<4x128xf32> to vector<1x128xf32>
    %15 = vector.broadcast %13 : vector<4x1xf32> to vector<4x128xf32>
    %16 = vector.broadcast %14 : vector<1x128xf32> to vector<4x128xf32>
    %17 = arith.mulf %15, %16 : vector<4x128xf32>
    %18 = arith.addf %12, %17 : vector<4x128xf32>
    %19 = vector.extract_strided_slice %2 {offsets = [0, 2], sizes = [4, 1], strides = [1, 1]} : vector<4x4xf32> to vector<4x1xf32>
    %20 = vector.extract_strided_slice %1 {offsets = [2, 0], sizes = [1, 128], strides = [1, 1]} : vector<4x128xf32> to vector<1x128xf32>
    %21 = vector.broadcast %19 : vector<4x1xf32> to vector<4x128xf32>
    %22 = vector.broadcast %20 : vector<1x128xf32> to vector<4x128xf32>
    %23 = arith.mulf %21, %22 : vector<4x128xf32>
    %24 = arith.addf %18, %23 : vector<4x128xf32>
    %25 = vector.extract_strided_slice %2 {offsets = [0, 3], sizes = [4, 1], strides = [1, 1]} : vector<4x4xf32> to vector<4x1xf32>
    %26 = vector.extract_strided_slice %1 {offsets = [3, 0], sizes = [1, 128], strides = [1, 1]} : vector<4x128xf32> to vector<1x128xf32>
    %27 = vector.broadcast %25 : vector<4x1xf32> to vector<4x128xf32>
    %28 = vector.broadcast %26 : vector<1x128xf32> to vector<4x128xf32>
    %29 = arith.mulf %27, %28 : vector<4x128xf32>
    %30 = arith.addf %24, %29 : vector<4x128xf32>
    %cst = arith.constant 0.000000e+00 : f32
    %31 = vector.broadcast %cst : f32 to vector<4x128xf32>
    %32 = arith.maximumf %30, %31 : vector<4x128xf32>
    %c0_7 = arith.constant 0 : index
    %c0_8 = arith.constant 0 : index
    %c0_9 = arith.constant 0 : index
    %33 = vector.load %arg5[%c0_7, %c0_8, %c0_9] : memref<1x4x128xf32, #tpu.memory_space<vmem>>, vector<1x4x128xf32>
    %34 = vector.shape_cast %33 : vector<1x4x128xf32> to vector<4x128xf32>
    %35 = vector.shape_cast %32 : vector<4x128xf32> to vector<1x4x128xf32>
    tpu.vector_store %arg5[%c0_7, %c0_8, %c0_9], %35 {strides = array<i32>} : memref<1x4x128xf32, #tpu.memory_space<vmem>>, vector<1x4x128xf32>,
    return
  }
  func.func @transform_0(%arg0: i32, %arg1: i32) -> (i32, i32, i32) {
    %c0_i32 = arith.constant 0 : i32
    %c0_i32_0 = arith.constant 0 : i32
    %c0_i32_1 = arith.constant 0 : i32
    return %arg0, %c0_i32, %c0_i32_0 : i32, i32, i32
  }
  func.func @transform_1(%arg0: i32, %arg1: i32) -> (i32, i32, i32) {
    %c0_i32 = arith.constant 0 : i32
    %c0_i32_0 = arith.constant 0 : i32
    return %arg0, %c0_i32, %arg1 : i32, i32, i32
  }
  func.func @transform_2(%arg0: i32, %arg1: i32) -> (i32, i32) {
    %c0_i32 = arith.constant 0 : i32
    %c0_i32_0 = arith.constant 0 : i32
    %c0_i32_1 = arith.constant 0 : i32
    return %c0_i32, %c0_i32_0 : i32, i32
  }
  func.func @transform_3(%arg0: i32, %arg1: i32) -> (i32, i32, i32) {
    %c0_i32 = arith.constant 0 : i32
    %c0_i32_0 = arith.constant 0 : i32
    return %arg0, %c0_i32, %arg1 : i32, i32, i32
  }
}

</mosaic_0001>

<bundles_post_ra>
// kernel: tpu_custom_call.1
= control target key start
LH: loop header
LB: loop body
LE: loop exit
PB: predicated region body
PF: predicated region fallthrough
CT: control target
= control target key end

     0   :  { %8 = vsyncpa [#allocation3], 0  ;;  %s788_s0 = inlined_call_operand.vmem [shape: f32[2,4,1], index: 0, kind: input, shape index: {}]   ;;  %s789_s1 = inlined_call_operand.hbm [shape: f32[2,4,256], index: 1, kind: input, shape index: {}]   ;;  %s790_s2 = inlined_call_operand.vmem [shape: f32[4,4], index: 2, kind: input, shape index: {}]   ;;  %s791_s3 = inlined_call_operand.hbm [shape: f32[2,4,256], index: 3, kind: output, shape index: {}]  }
   0x1   :  { %10 = vsyncpa [#allocation3 + $0x1], 0 }
   0x2   :  { %11 = vsyncpa [#allocation4], 0 }
   0x3   :  { %13 = vsyncpa [#allocation4 + $0x1], 0  ;;  %s634_s12 = smov 0   ;;  %s636_s13 = smov 0  }
   0x4   :  { %s638_s14 = smov 0   ;;  %s640_s15 = smov 0  }
   0x5   :  { %s642_s16 = smov 0   ;;  %s644_s17 = smov 0  }
   0x6   :  { %s646_s18 = smov 0   ;;  %s648_s19 = smov 0  }
   0x7 LB: > { %s377_s20 = sadd.s32 4294967295, %s608_s19   ;;  %s378_s21 = sadd.s32 4294967294, %s608_s19   ;;  %s608_s19 = sphi %s648_s19, %s19_s19   ;;  %s604_s18 = sphi %s646_s18, %s805_s18   ;;  %s600_s17 = sphi %s644_s17, %s804_s17   ;;  %s596_s16 = sphi %s642_s16, %s803_s16   ;;  %s592_s15 = sphi %s640_s15, %s802_s15   ;;  %s588_s14 = sphi %s638_s14, %s801_s14   ;;  %s584_s13 = sphi %s636_s13, %s800_s13   ;;  %s580_s12 = sphi %s634_s12, %s799_s12  }
   0x8   : > { %s28_s22 = sadd.s32 1, %s600_s17  ;;  %s31_s23 = sadd.s32 1, %s604_s18 }
   0x9   : > { %p29_p0 = scmp.ge.s32.totalorder %s28_s22, 2  ;;  %s66_s24 = sadd.s32 1, %s588_s14 }
   0xa   : > { %p73_p1 = scmp.ne.s32.totalorder %s588_s14, %s584_s13  ;;  %p74_p2 = scmp.eq.s32.totalorder %s608_s19, 0 }
   0xb   : > { %s807_s22 = smov (%p29_p0, %s28_s22), 0  ;;  %s809_s23 = smov (!%p29_p0, %s31_s23), %s604_s18 }
   0xc   : > { %s62_s25 = ssub.s32 %s600_s17, %s807_s22  ;;  %p687_p3 = por %p74_p2, %p73_p1 }
   0xd   : > { %p33_p4 = scmp.ge.s32.totalorder %s809_s23, 2  ;;  %p79_p5 = scmp.ne.s32.totalorder %s584_s13, %s580_s12 }
   0xe   : > { %p80_p6 = scmp.eq.s32.totalorder %s377_s20, 0  ;;  %p126_p7 = scmp.eq.s32.totalorder %s377_s20, 3 }
   0xf   : > { %s811_s23 = smov (%p33_p4, %s809_s23), 0  ;;  %p132_p10 = scmp.eq.s32.totalorder %s378_s21, 3 }
  0x10   : > { %794 = sst [smem:[#allocation8_spill]] %s811_s23  ;;  %p695_p8 = por %p80_p6, %p79_p5 }
  0x11   : > { %p699_p9 = por %p126_p7, %p73_p1  ;;  %s61_s29 = ssub.s32 %s604_s18, %s811_s23 }
  0x12   : > { %s63_s30 = sor.u32 %s62_s25, %s61_s29  ;;  %p705_p12 = por %p132_p10, %p79_p5 }
  0x13   : > { %p64_p11 = scmp.eq.s32.totalorder %s63_s30, 0  ;;  %p405_p13 = scmp.lt.s32.totalorder %s608_s19, 4 }
  0x14   : > { %s162_s5 = sand.u32 1, %s588_s14   ;;  %s382_s8 = sshll.u32 %s604_s18, 1 }
  0x15   : > { %s712_s6 = scalar_select %p64_p11, %s588_s14, %s66_s24  }
  0x16   : > { %s381_s7 = sshll.u32 %s162_s5, 2  ;;  %s170_s9 = sadd.s32 %s600_s17, %s382_s8 }
  0x17   : > { %s166_s10 = scalar_lea.vmem [#allocation2], %s381_s7  ;;  %s383_s20 = sshll.u32 %s170_s9, 2 }
  0x18   : > { %s176_s11 = sshll.u32 %s166_s10, 4  ;;  %s172_s29 = scalar_lea.hbm %s789_s1, %s383_s20  ;;  %s177_s11 = int_to_ptr.vmem [resolvable:$true] %s176_s11 }
  0x19   : > { %p398_p0 = pnand %p405_p13, %p687_p3  ;;  %s174_s30 = sshll.u32 %s172_s29, 4  ;;  %s175_s30 = int_to_ptr.hbm [resolvable:$true] %s174_s30 }
  0x1a   : > { %p384_p1 = scmp.ge.s32.totalorder %s608_s19, 1  ;;  %s163_s23 = scalar_lea.sflag [#allocation3], %s162_s5 }
  0x1b   : > { %400 = dma.hbm_to_vmem [thread:$0]  (!%p398_p0), %s175_s30, 64, %s177_s11, %s163_s23  }
  0x1c   : > { %p181_p2 = scmp.lt.s32.totalorder %s608_s19, 5 }
  0x1e   : > { %p182_p4 = pnand %p384_p1, %p181_p2 }
  0x1f   : > { %s724_s24 = sand.u32 (!%p182_p4), 1, %s584_s13  }
  0x20   : > { %185 = sbr.rel (%p182_p4) target bundleno = 176 (0xb0), region = 32  ;;  %s385_s7 = sshll.u32 (!%p182_p4), %s724_s24, 2 }
  0x21   : > { %s188_s8 = scalar_lea.sflag (!%p182_p4), [#allocation3], %s724_s24  ;;  %s191_s26 = scalar_lea.vmem (!%p182_p4), [#allocation2], %s385_s7 }
  0x25   : > { %571 = dma.done.wait (%p695_p8), %s188_s8, 64  }
  0x26   : > { %573 = vsyncadd (%p695_p8), %s188_s8, 4294967232  ;;  %p219_p3 = scmp.lt.s32.totalorder %s596_s16, 1  ;;  %v610_v0 = vmov 0   ;;  %v611_v1 = vmov 1   ;;  %v612_v2 = vmov 3   ;;  %v613_v5 = vmov 2  }
  0x27   : > { %475 = vset.pattern.permute.xlu0 %v610_v0  ;;  %476 = vset.pattern.permute.xlu1 %v611_v1  ;;  %v224_v3 = vld [vmem:[%s790_s2] sm:$0xf]  ;;  %s389_s21 = sshll.u32 %s596_s16, 1  ;;  %s263_s5 = scalar_lea.sflag [#allocation4], %s724_s24 }
  0x28   : > { %478 = vset.pattern.permute.xlu2 %v612_v2  ;;  %s220_s23 = scalar_select %p219_p3, %s596_s16, 1  ;;  %233 = vperm.xlu0 %475, %v224_v3   ;;  %v223_v7 = vld [vmem:[%s191_s26] sm:$0xf] }
  0x29   : > { %240 = vperm.xlu1 %476, %v224_v3   ;;  %254 = vperm.xlu2 %478, %v224_v3   ;;  %v236_v9 = vperm.slane %v223_v7, 0  ;;  %v243_v10 = vperm.slane %v223_v7, 1  ;;  %s273_s25 = sadd.s32 %s592_s15, %s389_s21  ;;  %v250_v11 = vperm.slane %v223_v7, 2  ;;  %v257_v13 = vperm.slane %v223_v7, 3  ;;  %s218_s15 = scalar_lea.vmem [#allocation5], %s385_s7 }
  0x2a   : > { %s387_s10 = sshll.u32 %s220_s23, 2  ;;  %s390_s29 = sshll.u32 %s273_s25, 2 }
  0x2b   : > { %s222_s20 = scalar_lea.vmem %s788_s0, %s387_s10  ;;  %s275_s16 = scalar_lea.hbm %s791_s3, %s390_s29 }
  0x2c   : > { %v225_v4 = vld [vmem:[%s222_s20] sm:$0xf]  ;;  %s277_s26 = sshll.u32 %s218_s15, 4  ;;  %s279_s23 = sshll.u32 %s275_s16, 4  ;;  %s278_s26 = int_to_ptr.vmem [resolvable:$true] %s277_s26  ;;  %s280_s23 = int_to_ptr.hbm [resolvable:$true] %s279_s23 }
  0x2d   : > { %s524_s9 = sshra.s32 %s280_s23, 4  ;;  %s530_s20 = scalar_lea.hbm %s791_s3, 16  ;;  %s525_s9 = int_to_ptr.hbm [resolvable:$true] %s524_s9 }
  0x2e   : > { %s526_s10 = scalar_lea.hbm %s525_s9, 4  ;;  %p531_p8 = scmp.lt.s32.totalorder %s525_s9, %s791_s3 }
  0x2f   : > { %p527_p5 = scmp.ne.s32.totalorder %s525_s9, %s526_s10  ;;  %p532_p10 = scmp.lt.s32.totalorder %s530_s20, %s526_s10 }
  0x30   : > { %228 = vperm.xlu0 %475, %v225_v4  }
  0x31   : > { %477 = vset.pattern.permute.xlu1 %v613_v5  ;;  %p528_p6 = pnand %p527_p5, %p699_p9  ;;  %p533_p11 = por %p532_p10, %p531_p8 }
  0x32   : > { %247 = vperm.xlu1 %477, %v224_v3  }
  0x33   : > { %p529_p7 = pneg %p528_p6 }
  0x35   : > { %p534_p13 = pnand %p533_p11, %p529_p7 }
  0x38   : > { %479 = vset.pattern.permute.xlu0 %v612_v2 }
  0x83   : > { %v255_v15 = vpop.permute.xlu2 %254 }
  0x84   : > { %v258_v21 = vmul.f32 %v257_v13, %v255_v15 }
  0x9a   : > { %v234_v6 = vpop.permute.xlu0 %233 }
  0x9b   : > { %v241_v8 = vpop.permute.xlu1 %240  ;;  %v237_v12 = vmul.f32 %v236_v9, %v234_v6 }
  0x9c   : > { %v244_v16 = vmul.f32 %v243_v10, %v241_v8 }
  0xa2   : > { %v229_v14 = vpop.permute.xlu0 %228 }
  0xa3   : > { %v238_v17 = vadd.f32 %v237_v12, %v229_v14 }
  0xa4   : > { %v248_v18 = vpop.permute.xlu1 %247 }
  0xa5   : > { %v251_v19 = vmul.f32 %v250_v11, %v248_v18  ;;  %v245_v20 = vadd.f32 %v244_v16, %v238_v17 }
  0xa7   : > { %v252_v22 = vadd.f32 %v251_v19, %v245_v20 }
  0xa9   : > { %v259_v23 = vadd.f32 %v258_v21, %v252_v22 }
  0xab   : > { %v260_v24 = vmax.f32 %v259_v23, 0.0 }
  0xad   : > { %261 = vst [vmem:[%s218_s15] sm:$0xf] %v260_v24 }
  0xae   : > { %537 = shalt.err (!%p534_p13)
}
  0xaf   : > { %395 = dma.vmem_to_hbm [thread:$0]  (%p699_p9), %s278_s26, 64, %s280_s23, %s263_s5  }
  0xb0 PF: > { %p406_p0 = scmp.ge.s32.totalorder %s608_s19, 2  ;;  %s291_s24 = sand.u32 1, %s580_s12  }
  0xb1   : > { %s292_s25 = scalar_lea.sflag [#allocation4], %s291_s24 }
  0xb2   : > { %p402_p1 = pnand %p406_p0, %p705_p12 }
  0xb4   : > { %p403_p2 = pneg %p402_p1 }
  0xb6   : > { %575 = dma.done.wait (%p403_p2), %s292_s25, 64  }
  0xb7   : > { %577 = vsyncadd (%p403_p2), %s292_s25, 4294967232  ;;  %s19_s19 = sadd.s32 1, %s608_s19   ;;  %s798_s28 = sld [smem:[#allocation8_spill]] }
  0xb8   : > { %p16_p4 = scmp.ge.s32.totalorder %s19_s19, 6   ;;  %s799_s12 = smov %s584_s13 }
  0xb9   : > { %s800_s13 = smov %s588_s14  ;;  %s801_s14 = smov %s712_s6 }
  0xba   : > { %s802_s15 = smov %s600_s17  ;;  %s803_s16 = smov %s604_s18 }
  0xbb   : > { %s804_s17 = smov %s807_s22  ;;  %18 = sbr.rel (!%p16_p4) target bundleno = 7 (0x7), region = 80 }
  0xbd   : > { %s805_s18 = smov %s798_s28 }
  0xc0   :  { %298 = vsyncpa [#allocation3], 1 }
  0xc1   :  { %300 = vsyncpa [#allocation3 + $0x1], 1 }
  0xc2   :  { %301 = vsyncpa [#allocation4], 1 }
  0xc3   :  { %303 = vsyncpa [#allocation4 + $0x1], 1 }

</bundles_post_ra>
